<compile_context>
chip_gen: v7x
topology: tpu7x:2x2x1
jax: 0.10.0
libtpu: 0.0.40
codegen_flags: <defaults>
</compile_context>

<pallas_src>
import jax
import jax.numpy as jnp
from jax import lax
from jax.experimental import pallas as pl
from jax.experimental.pallas import tpu as pltpu

# ---- hyperparameters (stand-ins for opt.*) ---------------------------------
UNIT_COUNT = 32                                                     # opt.unit_count
AGE_GROUP = 4
SIGMA = 0.5                                                         # opt.sigma
CONV_DIM = int((AGE_GROUP - (AGE_GROUP - 1) * SIGMA) * UNIT_COUNT)  # 80
STRIDE = int((1.0 - SIGMA) * UNIT_COUNT)                            # 16
BATCH = 8

BN_EPS = 1e-5
LEAKY_SLOPE = 0.01                                                  # nn.LeakyReLU() default

# ---- packed parameter slab layout (rows x CONV_DIM, sections 8-row aligned) --
#  row   0       gamma1
#  row   1       beta1
#  row   2       gamma2
#  row   3       beta2
#  rows [4:8)    pad
#  rows [8:40)   w1   (UNIT_COUNT, CONV_DIM)
#  rows [40:72)  w2   (UNIT_COUNT, CONV_DIM)
#  (Linear biases intentionally absent: BN's batch-mean subtraction cancels them.)
G1_R, BE1_R, G2_R, BE2_R = 0, 1, 2, 3
W1_R = 8
W2_R = 40
SLAB_ROWS = 72


def residual_block_kernel(x_ref, tid_ref, p_ref, out_ref):
    x = x_ref[...]                     # (B, U)  f32
    tid = tid_ref[...]                 # (B, 1)  i32

    inv_b = 1.0 / x.shape[0]

    def conv_bn_relu_route(inp, w, gamma, beta):
        # Linear(U, C) -- bias omitted (cancelled by BN's mean subtraction below).
        h = jnp.dot(inp, w, preferred_element_type=jnp.float32)          # (B, C)

        # BatchNorm1d(C), training mode: biased batch statistics over dim 0.
        # Single pass (independent sublane reductions), affine folded, var clamped.
        s1 = jnp.sum(h, axis=0, keepdims=True)                           # (1, C)
        s2 = jnp.sum(h * h, axis=0, keepdims=True)                       # (1, C)
        mean = s1 * inv_b
        var = jnp.maximum(s2 * inv_b - mean * mean, 0.0)
        scale = gamma * lax.rsqrt(var + BN_EPS)
        shift = beta - mean * scale
        h_bn = h * scale + shift

        # LeakyReLU (negative_slope = 0.01)
        act = jnp.where(h_bn >= 0, h_bn, LEAKY_SLOPE * h_bn)

        # TaskRouter: row i takes act[i, tid[i]*STRIDE : tid[i]*STRIDE + U].
        # Select chain over AGE_GROUP static lane slices (cmp + select per group).
        routed = jnp.zeros_like(inp)
        for g in range(AGE_GROUP):
            routed = jnp.where(tid == g,
                               act[:, g * STRIDE: g * STRIDE + UNIT_COUNT],
                               routed)
        return routed

    # Static ref slices: only the rows actually used are loaded into vregs.
    w1 = p_ref[W1_R:W1_R + UNIT_COUNT, :]
    w2 = p_ref[W2_R:W2_R + UNIT_COUNT, :]
    g1 = p_ref[G1_R:G1_R + 1, :]
    be1 = p_ref[BE1_R:BE1_R + 1, :]
    g2 = p_ref[G2_R:G2_R + 1, :]
    be2 = p_ref[BE2_R:BE2_R + 1, :]

    x2 = conv_bn_relu_route(x, w1, g1, be1)
    x2 = conv_bn_relu_route(x2, w2, g2, be2)
    out_ref[...] = x2 + x


def residual_block(x, task_ids, param_slab):
    """Forward of ResidualBlock: returns {0: routed2 + x, 1: task_ids}."""
    B = x.shape[0]
    vmem = pl.BlockSpec(memory_space=pltpu.MemorySpace.VMEM)
    out = pl.pallas_call(
        residual_block_kernel,
        out_shape=jax.ShapeDtypeStruct((B, UNIT_COUNT), jnp.float32),
        in_specs=[vmem, vmem, vmem],
        out_specs=vmem,
    )(x, task_ids.reshape(B, 1).astype(jnp.int32), param_slab)
    return {0: out, 1: task_ids}


def init_params(key):
    """PyTorch-default-style init: Linear uniform ±1/sqrt(fan_in); BN gamma=1, beta=0."""
    k1, k2, k3, k4 = jax.random.split(key, 4)
    bound = 1.0 / (UNIT_COUNT ** 0.5)
    w1 = jax.random.uniform(k1, (UNIT_COUNT, CONV_DIM), jnp.float32, -bound, bound)
    b1 = jax.random.uniform(k2, (1, CONV_DIM), jnp.float32, -bound, bound)
    w2 = jax.random.uniform(k3, (UNIT_COUNT, CONV_DIM), jnp.float32, -bound, bound)
    b2 = jax.random.uniform(k4, (1, CONV_DIM), jnp.float32, -bound, bound)
    g1 = jnp.ones((1, CONV_DIM), jnp.float32)
    be1 = jnp.zeros((1, CONV_DIM), jnp.float32)
    g2 = jnp.ones((1, CONV_DIM), jnp.float32)
    be2 = jnp.zeros((1, CONV_DIM), jnp.float32)
    return w1, b1, g1, be1, w2, b2, g2, be2


def pack_params(w1, b1, g1, be1, w2, b2, g2, be2):
    """Pack only what the kernel needs (biases dropped: BN cancels them)."""
    del b1, b2
    pad = jnp.zeros((4, CONV_DIM), jnp.float32)
    slab = jnp.concatenate([g1, be1, g2, be2, pad, w1, w2], axis=0)
    assert slab.shape == (SLAB_ROWS, CONV_DIM)
    return slab


def reference_forward(x, task_ids, w1, b1, g1, be1, w2, b2, g2, be2):
    """Pure-JAX literal translation (keeps the Linear bias and a real per-row gather)."""
    def block(inp, w, b, gamma, beta):
        h = inp @ w + b
        mean = h.mean(axis=0, keepdims=True)
        var = ((h - mean) ** 2).mean(axis=0, keepdims=True)
        h = (h - mean) / jnp.sqrt(var + BN_EPS) * gamma + beta
        act = jnp.where(h >= 0, h, LEAKY_SLOPE * h)
        offs = task_ids.astype(jnp.int32) * STRIDE                       # (B,)
        cols = offs[:, None] + jnp.arange(UNIT_COUNT)[None, :]           # (B, U)
        return jnp.take_along_axis(act, cols, axis=1)

    x2 = block(x, w1, b1, g1, be1)
    x2 = block(x2, w2, b2, g2, be2)
    return x2 + x


# TODO(synk): BatchNorm running_mean/running_var buffer updates (training-time side
# effect of the PyTorch module) are not produced; forward output is unaffected.

if __name__ == "__main__":
    key = jax.random.PRNGKey(0)
    kx, kt, kp = jax.random.split(key, 3)

    x = jax.random.normal(kx, (BATCH, UNIT_COUNT), dtype=jnp.float32)
    task_ids = jax.random.randint(kt, (BATCH,), 0, AGE_GROUP, dtype=jnp.int32)
    params = init_params(kp)
    slab = pack_params(*params)

    result = residual_block(x, task_ids, slab)
    out = jax.block_until_ready(result[0])

    ref = reference_forward(x, task_ids, *params)
    assert out.shape == (BATCH, UNIT_COUNT)
    assert jnp.array_equal(result[1], task_ids)
    assert jnp.allclose(out, ref, atol=1e-4, rtol=1e-4), (out, ref)
    print("KERNEL_OK")
</pallas_src>

<mosaic_0001>
module attributes {stable_mosaic.version = 11 : i64} {
  func.func @residual_block_kernel(%arg0: memref<8x32xf32, #tpu.memory_space<vmem>>, %arg1: memref<8x1xi32, #tpu.memory_space<vmem>>, %arg2: memref<72x80xf32, #tpu.memory_space<vmem>>, %arg3: memref<8x32xf32, #tpu.memory_space<vmem>>) attributes {dimension_semantics = [], scalar_prefetch = 0 : i64, scratch_operands = 0 : i64, tpu.core_type = #tpu.core_type<tc>} {
    %c0 = arith.constant 0 : index
    %c0_0 = arith.constant 0 : index
    %0 = vector.load %arg0[%c0, %c0_0] : memref<8x32xf32, #tpu.memory_space<vmem>>, vector<8x32xf32>
    %c0_1 = arith.constant 0 : index
    %c0_2 = arith.constant 0 : index
    %1 = vector.load %arg1[%c0_1, %c0_2] : memref<8x1xi32, #tpu.memory_space<vmem>>, vector<8x1xi32>
    %c8 = arith.constant 8 : index
    %c0_3 = arith.constant 0 : index
    %2 = vector.load %arg2[%c8, %c0_3] : memref<72x80xf32, #tpu.memory_space<vmem>>, vector<32x80xf32>
    %c40 = arith.constant 40 : index
    %c0_4 = arith.constant 0 : index
    %3 = vector.load %arg2[%c40, %c0_4] : memref<72x80xf32, #tpu.memory_space<vmem>>, vector<32x80xf32>
    %c0_5 = arith.constant 0 : index
    %c0_6 = arith.constant 0 : index
    %4 = vector.load %arg2[%c0_5, %c0_6] : memref<72x80xf32, #tpu.memory_space<vmem>>, vector<1x80xf32>
    %c1 = arith.constant 1 : index
    %c0_7 = arith.constant 0 : index
    %5 = vector.load %arg2[%c1, %c0_7] : memref<72x80xf32, #tpu.memory_space<vmem>>, vector<1x80xf32>
    %c2 = arith.constant 2 : index
    %c0_8 = arith.constant 0 : index
    %6 = vector.load %arg2[%c2, %c0_8] : memref<72x80xf32, #tpu.memory_space<vmem>>, vector<1x80xf32>
    %c3 = arith.constant 3 : index
    %c0_9 = arith.constant 0 : index
    %7 = vector.load %arg2[%c3, %c0_9] : memref<72x80xf32, #tpu.memory_space<vmem>>, vector<1x80xf32>
    %cst = arith.constant dense<0.000000e+00> : vector<8x80xf32>
    %8 = tpu.matmul %0, %2, %cst {dimension_numbers = #tpu.dot_dimension_numbers<[1], [0], [0], [1], [0, 0, 1, 1], [], []>} : vector<8x32xf32>, vector<32x80xf32>, vector<8x80xf32> -> vector<8x80xf32>
    %cst_10 = arith.constant dense<0.000000e+00> : vector<80xf32>
    %9 = vector.multi_reduction <add>, %8, %cst_10 [0] : vector<8x80xf32> to vector<80xf32>
    %10 = vector.shape_cast %9 : vector<80xf32> to vector<1x80xf32>
    %11 = arith.mulf %8, %8 : vector<8x80xf32>
    %cst_11 = arith.constant dense<0.000000e+00> : vector<80xf32>
    %12 = vector.multi_reduction <add>, %11, %cst_11 [0] : vector<8x80xf32> to vector<80xf32>
    %13 = vector.shape_cast %12 : vector<80xf32> to vector<1x80xf32>
    %cst_12 = arith.constant 1.250000e-01 : f32
    %14 = vector.broadcast %cst_12 : f32 to vector<1x80xf32>
    %15 = arith.mulf %10, %14 : vector<1x80xf32>
    %cst_13 = arith.constant 1.250000e-01 : f32
    %16 = vector.broadcast %cst_13 : f32 to vector<1x80xf32>
    %17 = arith.mulf %13, %16 : vector<1x80xf32>
    %18 = arith.mulf %15, %15 : vector<1x80xf32>
    %19 = arith.subf %17, %18 : vector<1x80xf32>
    %cst_14 = arith.constant 0.000000e+00 : f32
    %20 = vector.broadcast %cst_14 : f32 to vector<1x80xf32>
    %21 = arith.maximumf %19, %20 : vector<1x80xf32>
    %cst_15 = arith.constant 9.99999974E-6 : f32
    %22 = vector.broadcast %cst_15 : f32 to vector<1x80xf32>
    %23 = arith.addf %21, %22 : vector<1x80xf32>
    %24 = math.rsqrt %23 : vector<1x80xf32>
    %25 = arith.mulf %4, %24 : vector<1x80xf32>
    %26 = arith.mulf %15, %25 : vector<1x80xf32>
    %27 = arith.subf %5, %26 : vector<1x80xf32>
    %28 = vector.broadcast %25 : vector<1x80xf32> to vector<8x80xf32>
    %29 = arith.mulf %8, %28 : vector<8x80xf32>
    %30 = vector.broadcast %27 : vector<1x80xf32> to vector<8x80xf32>
    %31 = arith.addf %29, %30 : vector<8x80xf32>
    %cst_16 = arith.constant 0.000000e+00 : f32
    %32 = vector.broadcast %cst_16 : f32 to vector<8x80xf32>
    %33 = arith.cmpf oge, %31, %32 : vector<8x80xf32>
    %cst_17 = arith.constant 0.00999999977 : f32
    %34 = vector.broadcast %cst_17 : f32 to vector<8x80xf32>
    %35 = arith.mulf %34, %31 : vector<8x80xf32>
    %36 = arith.select %33, %31, %35 : vector<8x80xi1>, vector<8x80xf32>
    %cst_18 = arith.constant 0.000000e+00 : f32
    %37 = vector.broadcast %cst_18 : f32 to vector<8x32xf32>
    %c0_i32 = arith.constant 0 : i32
    %38 = vector.broadcast %c0_i32 : i32 to vector<8x1xi32>
    %39 = arith.cmpi eq, %1, %38 : vector<8x1xi32>
    %40 = vector.extract_strided_slice %36 {offsets = [0, 0], sizes = [8, 32], strides = [1, 1]} : vector<8x80xf32> to vector<8x32xf32>
    %41 = vector.shape_cast %39 : vector<8x1xi1> to vector<8x1xi1>
    %42 = vector.broadcast %41 : vector<8x1xi1> to vector<8x32xi1>
    %43 = arith.select %42, %40, %37 : vector<8x32xi1>, vector<8x32xf32>
    %c1_i32 = arith.constant 1 : i32
    %44 = vector.broadcast %c1_i32 : i32 to vector<8x1xi32>
    %45 = arith.cmpi eq, %1, %44 : vector<8x1xi32>
    %46 = vector.extract_strided_slice %36 {offsets = [0, 16], sizes = [8, 32], strides = [1, 1]} : vector<8x80xf32> to vector<8x32xf32>
    %47 = vector.shape_cast %45 : vector<8x1xi1> to vector<8x1xi1>
    %48 = vector.broadcast %47 : vector<8x1xi1> to vector<8x32xi1>
    %49 = arith.select %48, %46, %43 : vector<8x32xi1>, vector<8x32xf32>
    %c2_i32 = arith.constant 2 : i32
    %50 = vector.broadcast %c2_i32 : i32 to vector<8x1xi32>
    %51 = arith.cmpi eq, %1, %50 : vector<8x1xi32>
    %52 = vector.extract_strided_slice %36 {offsets = [0, 32], sizes = [8, 32], strides = [1, 1]} : vector<8x80xf32> to vector<8x32xf32>
    %53 = vector.shape_cast %51 : vector<8x1xi1> to vector<8x1xi1>
    %54 = vector.broadcast %53 : vector<8x1xi1> to vector<8x32xi1>
    %55 = arith.select %54, %52, %49 : vector<8x32xi1>, vector<8x32xf32>
    %c3_i32 = arith.constant 3 : i32
    %56 = vector.broadcast %c3_i32 : i32 to vector<8x1xi32>
    %57 = arith.cmpi eq, %1, %56 : vector<8x1xi32>
    %58 = vector.extract_strided_slice %36 {offsets = [0, 48], sizes = [8, 32], strides = [1, 1]} : vector<8x80xf32> to vector<8x32xf32>
    %59 = vector.shape_cast %57 : vector<8x1xi1> to vector<8x1xi1>
    %60 = vector.broadcast %59 : vector<8x1xi1> to vector<8x32xi1>
    %61 = arith.select %60, %58, %55 : vector<8x32xi1>, vector<8x32xf32>
    %cst_19 = arith.constant dense<0.000000e+00> : vector<8x80xf32>
    %62 = tpu.matmul %61, %3, %cst_19 {dimension_numbers = #tpu.dot_dimension_numbers<[1], [0], [0], [1], [0, 0, 1, 1], [], []>} : vector<8x32xf32>, vector<32x80xf32>, vector<8x80xf32> -> vector<8x80xf32>
    %cst_20 = arith.constant dense<0.000000e+00> : vector<80xf32>
    %63 = vector.multi_reduction <add>, %62, %cst_20 [0] : vector<8x80xf32> to vector<80xf32>
    %64 = vector.shape_cast %63 : vector<80xf32> to vector<1x80xf32>
    %65 = arith.mulf %62, %62 : vector<8x80xf32>
    %cst_21 = arith.constant dense<0.000000e+00> : vector<80xf32>
    %66 = vector.multi_reduction <add>, %65, %cst_21 [0] : vector<8x80xf32> to vector<80xf32>
    %67 = vector.shape_cast %66 : vector<80xf32> to vector<1x80xf32>
    %cst_22 = arith.constant 1.250000e-01 : f32
    %68 = vector.broadcast %cst_22 : f32 to vector<1x80xf32>
    %69 = arith.mulf %64, %68 : vector<1x80xf32>
    %cst_23 = arith.constant 1.250000e-01 : f32
    %70 = vector.broadcast %cst_23 : f32 to vector<1x80xf32>
    %71 = arith.mulf %67, %70 : vector<1x80xf32>
    %72 = arith.mulf %69, %69 : vector<1x80xf32>
    %73 = arith.subf %71, %72 : vector<1x80xf32>
    %cst_24 = arith.constant 0.000000e+00 : f32
    %74 = vector.broadcast %cst_24 : f32 to vector<1x80xf32>
    %75 = arith.maximumf %73, %74 : vector<1x80xf32>
    %cst_25 = arith.constant 9.99999974E-6 : f32
    %76 = vector.broadcast %cst_25 : f32 to vector<1x80xf32>
    %77 = arith.addf %75, %76 : vector<1x80xf32>
    %78 = math.rsqrt %77 : vector<1x80xf32>
    %79 = arith.mulf %6, %78 : vector<1x80xf32>
    %80 = arith.mulf %69, %79 : vector<1x80xf32>
    %81 = arith.subf %7, %80 : vector<1x80xf32>
    %82 = vector.broadcast %79 : vector<1x80xf32> to vector<8x80xf32>
    %83 = arith.mulf %62, %82 : vector<8x80xf32>
    %84 = vector.broadcast %81 : vector<1x80xf32> to vector<8x80xf32>
    %85 = arith.addf %83, %84 : vector<8x80xf32>
    %cst_26 = arith.constant 0.000000e+00 : f32
    %86 = vector.broadcast %cst_26 : f32 to vector<8x80xf32>
    %87 = arith.cmpf oge, %85, %86 : vector<8x80xf32>
    %cst_27 = arith.constant 0.00999999977 : f32
    %88 = vector.broadcast %cst_27 : f32 to vector<8x80xf32>
    %89 = arith.mulf %88, %85 : vector<8x80xf32>
    %90 = arith.select %87, %85, %89 : vector<8x80xi1>, vector<8x80xf32>
    %cst_28 = arith.constant 0.000000e+00 : f32
    %91 = vector.broadcast %cst_28 : f32 to vector<8x32xf32>
    %c0_i32_29 = arith.constant 0 : i32
    %92 = vector.broadcast %c0_i32_29 : i32 to vector<8x1xi32>
    %93 = arith.cmpi eq, %1, %92 : vector<8x1xi32>
    %94 = vector.extract_strided_slice %90 {offsets = [0, 0], sizes = [8, 32], strides = [1, 1]} : vector<8x80xf32> to vector<8x32xf32>
    %95 = vector.shape_cast %93 : vector<8x1xi1> to vector<8x1xi1>
    %96 = vector.broadcast %95 : vector<8x1xi1> to vector<8x32xi1>
    %97 = arith.select %96, %94, %91 : vector<8x32xi1>, vector<8x32xf32>
    %c1_i32_30 = arith.constant 1 : i32
    %98 = vector.broadcast %c1_i32_30 : i32 to vector<8x1xi32>
    %99 = arith.cmpi eq, %1, %98 : vector<8x1xi32>
    %100 = vector.extract_strided_slice %90 {offsets = [0, 16], sizes = [8, 32], strides = [1, 1]} : vector<8x80xf32> to vector<8x32xf32>
    %101 = vector.shape_cast %99 : vector<8x1xi1> to vector<8x1xi1>
    %102 = vector.broadcast %101 : vector<8x1xi1> to vector<8x32xi1>
    %103 = arith.select %102, %100, %97 : vector<8x32xi1>, vector<8x32xf32>
    %c2_i32_31 = arith.constant 2 : i32
    %104 = vector.broadcast %c2_i32_31 : i32 to vector<8x1xi32>
    %105 = arith.cmpi eq, %1, %104 : vector<8x1xi32>
    %106 = vector.extract_strided_slice %90 {offsets = [0, 32], sizes = [8, 32], strides = [1, 1]} : vector<8x80xf32> to vector<8x32xf32>
    %107 = vector.shape_cast %105 : vector<8x1xi1> to vector<8x1xi1>
    %108 = vector.broadcast %107 : vector<8x1xi1> to vector<8x32xi1>
    %109 = arith.select %108, %106, %103 : vector<8x32xi1>, vector<8x32xf32>
    %c3_i32_32 = arith.constant 3 : i32
    %110 = vector.broadcast %c3_i32_32 : i32 to vector<8x1xi32>
    %111 = arith.cmpi eq, %1, %110 : vector<8x1xi32>
    %112 = vector.extract_strided_slice %90 {offsets = [0, 48], sizes = [8, 32], strides = [1, 1]} : vector<8x80xf32> to vector<8x32xf32>
    %113 = vector.shape_cast %111 : vector<8x1xi1> to vector<8x1xi1>
    %114 = vector.broadcast %113 : vector<8x1xi1> to vector<8x32xi1>
    %115 = arith.select %114, %112, %109 : vector<8x32xi1>, vector<8x32xf32>
    %116 = arith.addf %115, %0 : vector<8x32xf32>
    %c0_33 = arith.constant 0 : index
    %c0_34 = arith.constant 0 : index
    %117 = vector.load %arg3[%c0_33, %c0_34] : memref<8x32xf32, #tpu.memory_space<vmem>>, vector<8x32xf32>
    tpu.vector_store %arg3[%c0_33, %c0_34], %116 {strides = array<i32>} : memref<8x32xf32, #tpu.memory_space<vmem>>, vector<8x32xf32>,
    return
  }
}

</mosaic_0001>

<bundles_post_ra>
// kernel: tpu_custom_call.1
= control target key start
LH: loop header
LB: loop body
LE: loop exit
PB: predicated region body
PF: predicated region fallthrough
CT: control target
= control target key end

     0   :  { %8 = vsyncpa [#allocation3], 0  ;;  %s580_s0 = inlined_call_operand.vmem [shape: f32[8,32], index: 0, kind: input, shape index: {}]   ;;  %s581_s1 = inlined_call_operand.vmem [shape: s32[8,1], index: 1, kind: input, shape index: {}]   ;;  %s582_s2 = inlined_call_operand.hbm [shape: f32[72,80], index: 2, kind: input, shape index: {}]   ;;  %s583_s3 = inlined_call_operand.hbm [shape: f32[8,32], index: 3, kind: output, shape index: {}]  }
   0x1   :  { %9 = vsyncpa [#allocation4], 0  ;;  %s460_s12 = smov [#allocation2]   ;;  %s412_s16 = scalar_lea.hbm %s582_s2, 1152 }
   0x2   :  { %s19_s13 = sshll.u32 %s460_s12, 4  ;;  %p413_p0 = scmp.ne.s32.totalorder %s582_s2, %s412_s16  ;;  %s20_s13 = int_to_ptr.vmem [resolvable:$true] %s19_s13 }
   0x3   :  { %p416_p1 = scmp.lt.u32.totalorder %s412_s16, %s582_s2 }
   0x5   :  { %p418_p2 = pnand %p416_p1, %p413_p0 }
   0x7   :  { %421 = shalt.err (!%p418_p2)
}
   0x8   :  { %s422_s21 = scalar_lea.vmem %s20_s13, 1152  ;;  %p427_p4 = scmp.lt.s32.totalorder %s20_s13, %s20_s13 }
   0x9   :  { %p423_p3 = scmp.ne.s32.totalorder %s20_s13, %s422_s21  ;;  %p428_p5 = scmp.lt.s32.totalorder %s422_s21, %s422_s21 }
   0xb   :  { %p429_p6 = por %p428_p5, %p427_p4 }
   0xd   :  { %p430_p7 = pnand %p429_p6, %p423_p3 }
   0xf   :  { %433 = shalt.err (!%p430_p7)
}
  0x10   :  { %s461_s22 = smov 128   ;;  %s462_s23 = smov 8  }
  0x11   :  { %25 = dma.hbm_to_vmem [thread:$0]  %s582_s2, 1152, %s20_s13, [#allocation3], %s461_s22, %s461_s22, %s462_s23  }
  0x12   :  { %456 = dma.done.wait [#allocation3], 1152  }
  0x13   :  { %457 = vsyncadd [#allocation3], 4294966144  ;;  %v463_v0 = vmov 0.0|0.0   ;;  %vm464_vm0 = vmmov 0   ;;  %v465_v1 = vmov 0.0   ;;  %v466_v2 = vmov 0  }
  0x14   :  { %383 = vmatprep.subr.bf16.mxu0 %v463_v0  ;;  %369 = vmatprep.mubr.msk.f32.mxu0 %vm464_vm0, %v465_v1  ;;  %v31_v3 = vld [vmem:[#allocation2 + $0x8] sm:$0xff]  ;;  %v32_v4 = vld [vmem:[#allocation2 + $0x10] sm:$0xff]  ;;  %v33_v5 = vld [vmem:[#allocation2 + $0x18] sm:$0xff]  ;;  %vm43_vm3 = vcmask 261120   ;;  %vm117_vm4 = vcmask 654336   ;;  %v143_v36 = vlaneseq  ;;  %s469_s29 = smov 48  }
  0x15   :  { %406 = vset.pattern.permute.xlu0 %v466_v2  ;;  %407 = vset.pattern.permute.xlu1 %v466_v2  ;;  %v384_v6 = vpack.c.bf16 %v32_v4, %v31_v3  ;;  %v34_v7 = vld [vmem:[#allocation2 + $0x20] sm:$0xff]  ;;  %v35_v58 = vld [vmem:[#allocation2 + $0x28] sm:$0xff]  ;;  %v36_v59 = vld [vmem:[#allocation2 + $0x30] sm:$0xff]  ;;  %s470_s30 = smov [#allocation5]  }
  0x16   :  { %389 = vmatprep.subr.bf16.mxu1 %v463_v0  ;;  %380 = vmatprep.mubr.msk.f32.mxu1 %vm464_vm0, %v465_v1  ;;  %v510_v8 = vld [vmem:[%s581_s1] sm:$0xff]  ;;  %v387_v9 = vpack.c.bf16 %v34_v7, %v33_v5  ;;  %v144_v37 = vshrl.u32 %v143_v36, 7  ;;  %v37_v60 = vld [vmem:[#allocation2 + $0x38] sm:$0xff]  ;;  %v390_v61 = vpack.c.bf16 %v36_v59, %v35_v58  ;;  %s468_s1 = smov 80   ;;  %s340_s4 = sshll.u32 %s470_s30, 4  ;;  %s341_s4 = int_to_ptr.vmem [resolvable:$true] %s340_s4 }
  0x17   :  { %vm156_vm1 = vcmp.eq.s32.totalorder %v510_v8, 0  ;;  %vm163_vm2 = vcmp.eq.s32.totalorder %v510_v8, 1  ;;  %385 = vmatpush3.bf16.msra.mxu0 %v384_v6  ;;  %v520_v12 = vld [vmem:[%s580_s0] sm:$0xff]  ;;  %vm174_vm7 = vcmp.eq.s32.totalorder %v510_v8, 2  ;;  %s467_s0 = smov 16   ;;  %vm185_vm8 = vcmp.eq.s32.totalorder %v510_v8, 3  ;;  %p439_p9 = scmp.lt.s32.totalorder %s341_s4, %s341_s4 }
  0x18   :  { %v157_v10 = vsel %vm156_vm1, 1, %v466_v2  ;;  %386 = vmatprep.subr.bf16.mxu0 %v463_v0  ;;  %v164_v11 = vsel %vm163_vm2, 1, %v466_v2  ;;  %v39_v38 = vld [vmem:[#allocation2] sm:$0x1]  ;;  %v526_v39 = vsub.s32 0, %v144_v37  ;;  %v175_v53 = vsel %vm174_vm7, 1, %v466_v2  ;;  %391 = vmatpush3.bf16.msra.mxu1 %v390_v61 }
  0x19   :  { %159 = vperm.xlu0 %406, %v157_v10   ;;  %v40_v42 = vld [vmem:[#allocation2 + $0x1] sm:$0x1]  ;;  %v186_v54 = vsel %vm185_vm8, 1, %v466_v2  ;;  %392 = vmatprep.subr.bf16.mxu1 %v463_v0  ;;  %s434_s5 = scalar_lea.vmem %s341_s4, 128 }
  0x1a   :  { %v38_v62 = vld [vmem:[#allocation2 + $0x40] sm:$0xff]  ;;  %p435_p8 = scmp.ne.s32.totalorder %s341_s4, %s434_s5  ;;  %p440_p10 = scmp.lt.s32.totalorder %s434_s5, %s434_s5 }
  0x1b   :  { %388 = vmatpush3.bf16.msra.mxu0 %v387_v9  ;;  %v393_v63 = vpack.c.bf16 %v38_v62, %v37_v60 }
  0x1c   :  { %p441_p11 = por %p440_p10, %p439_p9 }
  0x1d   :  { %166 = vperm.xlu0 %406, %v164_v11   ;;  %394 = vmatpush3.bf16.msra.mxu1 %v393_v63 }
  0x1e   :  { %370 = vmatmul.mubr.msk.f32.vlgmr.msra.gmra.mrb[0].mxu0 %vm43_vm3, %v520_v12  ;;  %p442_p12 = pnand %p441_p11, %p435_p8 }
  0x98   :  { %v530_v49 = vpop.permute.xlu0 %159 }
  0x99   :  { %vm161_vm5 = vcmp.eq.s32.totalorder %v530_v49, 1 }
  0x9c   :  { %v540_v55 = vpop.permute.xlu0 %166 }
  0x9d   :  { %vm168_vm9 = vcmp.eq.s32.totalorder %v540_v55, 1 }
  0xf1   :  { %v113_v13 = vpop.f32.mrb[0].mxu0 }
  0xf2   :  { %v118_v14 = vsel %vm117_vm4, %v113_v13, 0.0  ;;  %v125_v15 = vmul.f32 %v113_v13, %v113_v13  ;;  %v371_v16 = vpop.f32.mrb[1].mxu0 }
  0xf3   :  { %v119_v17 = vrot.slane %v118_v14, 4 }
  0xf4   :  { %v126_v18 = vsel %vm117_vm4, %v125_v15, 0.0 }
  0xf5   :  { %v120_v19 = vadd.f32 %v119_v17, %v118_v14  ;;  %v127_v20 = vrot.slane %v126_v18, 4 }
  0xf7   :  { %v121_v21 = vrot.slane %v120_v19, 2  ;;  %v128_v22 = vadd.f32 %v127_v20, %v126_v18 }
  0xf9   :  { %v122_v23 = vadd.f32 %v121_v21, %v120_v19  ;;  %v129_v24 = vrot.slane %v128_v22, 2 }
  0xfb   :  { %v123_v25 = vrot.slane %v122_v23, 1  ;;  %v130_v26 = vadd.f32 %v129_v24, %v128_v22 }
  0xfd   :  { %v124_v27 = vadd.f32 %v123_v25, %v122_v23  ;;  %v131_v28 = vrot.slane %v130_v26, 1 }
  0xff   :  { %v132_v29 = vadd.f32 %v131_v28, %v130_v26  ;;  %v133_v30 = vmul.f32 0.125, %v124_v27 }
 0x101   :  { %v134_v31 = vmul.f32 0.125, %v132_v29  ;;  %v135_v32 = vmul.f32 %v133_v30, %v133_v30 }
 0x103   :  { %v136_v33 = vsub.f32 %v134_v31, %v135_v32  ;;  %v41_v31 = vld [vmem:[#allocation2 + $0x2] sm:$0x1] }
 0x105   :  { %v137_v34 = vmax.f32 %v136_v33, 0.0 }
 0x107   :  { %v138_v35 = vadd.f32 1e-05, %v137_v34  ;;  %v42_v34 = vld [vmem:[#allocation2 + $0x3] sm:$0x1] }
 0x109   :  { %408 = vrsqrt.f32 %v138_v35 }
 0x113   :  { %v409_v40 = vpop.eup %408 }
 0x114   :  { %v140_v41 = vmul.f32 %v409_v40, %v39_v38 }
 0x116   :  { %v141_v43 = vmul.f32 %v140_v41, %v133_v30  ;;  %v146_v44 = vrot.slane %v140_v41, %v526_v39 }
 0x118   :  { %v142_v45 = vsub.f32 %v40_v42, %v141_v43  ;;  %v147_v46 = vmul.f32 %v146_v44, %v113_v13 }
 0x11a   :  { %v151_v47 = vrot.slane %v142_v45, %v526_v39 }
 0x11c   :  { %v152_v48 = vadd.f32 %v151_v47, %v147_v46 }
 0x11e   :  { %vm153_vm6 = vcmp.ge.f32.partialorder %v152_v48, 0.0  ;;  %v154_v50 = vmul.f32 0.01, %v152_v48 }
 0x120   :  { %v155_v51 = vsel %vm153_vm6, %v152_v48, %v154_v50 }
 0x121   :  { %v162_v52 = vsel %vm161_vm5, %v155_v51, 0.0 }
 0x122   :  { %170 = vrot.lane.b32.xlu1 %v162_v52, %s467_s0 }
 0x126   :  { %177 = vperm.xlu1 %407, %v175_v53  }
 0x12a   :  { %188 = vperm.xlu1 %407, %v186_v54  }
 0x194   :  { %v171_v56 = vpop.permute.xlu1 %170 }
 0x195   :  { %v173_v57 = vsel %vm168_vm9, %v155_v51, %v171_v56 }
 0x196   :  { %181 = vrot.lane.b32.xlu0 %v173_v57, %s467_s0 }
 0x1a5   :  { %v178_v1 = vpop.permute.xlu1 %177 }
 0x1a6   :  { %vm179_vm10 = vcmp.eq.s32.totalorder %v178_v1, 1 }
 0x1a9   :  { %v189_v4 = vpop.permute.xlu1 %188 }
 0x1aa   :  { %vm190_vm11 = vcmp.eq.s32.totalorder %v189_v4, 1 }
 0x208   :  { %v182_v2 = vpop.permute.xlu0 %181 }
 0x209   :  { %v184_v3 = vsel %vm179_vm10, %v155_v51, %v182_v2 }
 0x20a   :  { %192 = vrot.lane.b32.xlu0 %v184_v3, %s467_s0 }
 0x27c   :  { %v193_v5 = vpop.permute.xlu0 %192 }
 0x27d   :  { %v195_v6 = vsel %vm190_vm11, %v155_v51, %v193_v5 }
 0x27e   :  { %197 = vrot.lane.b32.xlu1 %v195_v6, %s468_s1 }
 0x2f0   :  { %v198_v7 = vpop.permute.xlu1 %197 }
 0x2f1   :  { %381 = vmatmul.mubr.msk.f32.vlgmr.msra.gmra.mrb[0].mxu1 %vm43_vm3, %v198_v7 }
 0x3c4   :  { %v267_v0 = vpop.f32.mrb[0].mxu1 }
 0x3c5   :  { %v271_v8 = vsel %vm117_vm4, %v267_v0, 0.0  ;;  %v278_v9 = vmul.f32 %v267_v0, %v267_v0  ;;  %v382_v10 = vpop.f32.mrb[1].mxu1 }
 0x3c6   :  { %v272_v11 = vrot.slane %v271_v8, 4 }
 0x3c7   :  { %v279_v13 = vsel %vm117_vm4, %v278_v9, 0.0 }
 0x3c8   :  { %v273_v14 = vadd.f32 %v272_v11, %v271_v8  ;;  %v280_v15 = vrot.slane %v279_v13, 4 }
 0x3ca   :  { %v274_v16 = vrot.slane %v273_v14, 2  ;;  %v281_v17 = vadd.f32 %v280_v15, %v279_v13 }
 0x3cc   :  { %v275_v18 = vadd.f32 %v274_v16, %v273_v14  ;;  %v282_v19 = vrot.slane %v281_v17, 2 }
 0x3ce   :  { %v276_v20 = vrot.slane %v275_v18, 1  ;;  %v283_v21 = vadd.f32 %v282_v19, %v281_v17 }
 0x3d0   :  { %v277_v22 = vadd.f32 %v276_v20, %v275_v18  ;;  %v284_v23 = vrot.slane %v283_v21, 1 }
 0x3d2   :  { %v285_v24 = vadd.f32 %v284_v23, %v283_v21  ;;  %v286_v25 = vmul.f32 0.125, %v277_v22 }
 0x3d4   :  { %v287_v26 = vmul.f32 0.125, %v285_v24  ;;  %v288_v27 = vmul.f32 %v286_v25, %v286_v25 }
 0x3d6   :  { %v289_v28 = vsub.f32 %v287_v26, %v288_v27 }
 0x3d8   :  { %v290_v29 = vmax.f32 %v289_v28, 0.0 }
 0x3da   :  { %v291_v30 = vadd.f32 1e-05, %v290_v29 }
 0x3dc   :  { %410 = vrsqrt.f32 %v291_v30 }
 0x3e6   :  { %v411_v32 = vpop.eup %410 }
 0x3e7   :  { %v293_v33 = vmul.f32 %v411_v32, %v41_v31 }
 0x3e9   :  { %v294_v35 = vmul.f32 %v293_v33, %v286_v25  ;;  %v299_v36 = vrot.slane %v293_v33, %v526_v39 }
 0x3eb   :  { %v295_v37 = vsub.f32 %v42_v34, %v294_v35  ;;  %v300_v38 = vmul.f32 %v299_v36, %v267_v0 }
 0x3ed   :  { %v304_v40 = vrot.slane %v295_v37, %v526_v39 }
 0x3ef   :  { %v305_v41 = vadd.f32 %v304_v40, %v300_v38 }
 0x3f1   :  { %v307_v42 = vmul.f32 0.01, %v305_v41  ;;  %vm306_vm12 = vcmp.ge.f32.partialorder %v305_v41, 0.0 }
 0x3f3   :  { %v308_v43 = vsel %vm306_vm12, %v305_v41, %v307_v42 }
 0x3f4   :  { %v309_v44 = vsel %vm161_vm5, %v308_v43, 0.0 }
 0x3f5   :  { %311 = vrot.lane.b32.xlu0 %v309_v44, %s467_s0 }
 0x467   :  { %v312_v45 = vpop.permute.xlu0 %311 }
 0x468   :  { %v314_v46 = vsel %vm168_vm9, %v308_v43, %v312_v45 }
 0x469   :  { %316 = vrot.lane.b32.xlu1 %v314_v46, %s467_s0 }
 0x46d   :  { %325 = vrot.lane.b32.xlu1 %v520_v12, %s469_s29 }
 0x4db   :  { %v317_v47 = vpop.permute.xlu1 %316 }
 0x4dc   :  { %v319_v39 = vsel %vm179_vm10, %v308_v43, %v317_v47 }
 0x4dd   :  { %321 = vrot.lane.b32.xlu0 %v319_v39, %s467_s0 }
 0x4df   :  { %v326_v48 = vpop.permute.xlu1 %325 }
 0x54f   :  { %v322_v50 = vpop.permute.xlu0 %321 }
 0x550   :  { %v324_v49 = vsel %vm190_vm11, %v308_v43, %v322_v50 }
 0x551   :  { %v328_v51 = vadd.f32 %v326_v48, %v324_v49 }
 0x553   :  { %330 = vrot.lane.b32.xlu0 %v328_v51, %s468_s1 }
 0x5c5   :  { %v331_v52 = vpop.permute.xlu0 %330 }
 0x5c6   :  { %333 = vst.msk [vmem:[#allocation5] sm:$0xff] %vm43_vm3, %v331_v52 }
 0x5c7   :  { %445 = shalt.err (!%p442_p12)
}
 0x5c8   :  { %s446_s8 = scalar_lea.hbm %s583_s3, 128 }
 0x5c9   :  { %p447_p13 = scmp.ne.s32.totalorder %s583_s3, %s446_s8  ;;  %p450_p0 = scmp.lt.u32.totalorder %s446_s8, %s583_s3 }
 0x5cb   :  { %p452_p1 = pnand %p450_p0, %p447_p13 }
 0x5cd   :  { %455 = shalt.err (!%p452_p1)
}
 0x5ce   :  { %343 = dma.vmem_to_hbm [thread:$0]  %s341_s4, 128, %s583_s3, [#allocation4]  }
 0x5cf   :  { %458 = dma.done.wait [#allocation4], 128  }
 0x5d0   :  { %459 = vsyncadd [#allocation4], 4294967168 }
 0x5d1   :  { %347 = vsyncpa [#allocation3], 1 }
 0x5d2   :  { %348 = vsyncpa [#allocation4], 1 }

</bundles_post_ra>
